<compile_context>
chip_gen: v7x
topology: tpu7x:2x2x1
jax: 0.10.0
libtpu: 0.0.40
codegen_flags: <defaults>
</compile_context>

<pallas_src>
import functools

import jax
import jax.numpy as jnp
from jax.experimental import pallas as pl
from jax.experimental.pallas import tpu as pltpu


def nnlm_kernel(x_ref, ht_ref, d_ref, wt_ref, ut_ref, b_ref, o_ref):
    # x_ref : [B, K]            bf16, VMEM-resident across the whole grid
    # ht_ref: [K, n_hidden]     bf16, resident
    # d_ref : [1, n_hidden]     f32,  resident
    # wt_ref: [K, TN]           bf16, streamed per vocab tile
    # ut_ref: [n_hidden, TN]    bf16, streamed per vocab tile
    # b_ref : [1, TN]           f32,  streamed per vocab tile
    # o_ref : [B, TN]           f32 output tile
    X = x_ref[...]

    # hidden = tanh(d + X @ H^T); recomputed per tile from resident operands
    # (no extra HBM traffic, keeps the vocab grid axis fully parallel).
    hidden_f32 = jnp.tanh(
        d_ref[...] + jnp.dot(X, ht_ref[...], preferred_element_type=jnp.float32)
    )
    hidden = hidden_f32.astype(ut_ref.dtype)  # bf16 operand for the MXU

    o_ref[...] = (
        b_ref[...]
        + jnp.dot(X, wt_ref[...], preferred_element_type=jnp.float32)
        + jnp.dot(hidden, ut_ref[...], preferred_element_type=jnp.float32)
    )


def prepare_nnlm_params(C, H_w, d, U_w, W_w, b, *, param_dtype=jnp.bfloat16):
    """One-time parameter prep (hoisted out of the per-step hot path):
    transpose linear weights to [in, out] layout and cast to bf16."""
    return dict(
        C=C.astype(param_dtype),              # [vocab, m]
        Ht=H_w.T.astype(param_dtype),         # [K, n_hidden]
        Wt=W_w.T.astype(param_dtype),         # [K, vocab]
        Ut=U_w.T.astype(param_dtype),         # [n_hidden, vocab]
        d=d.reshape(1, -1).astype(jnp.float32),   # [1, n_hidden]
        b=b.reshape(1, -1).astype(jnp.float32),   # [1, vocab]
    )


@functools.partial(jax.jit, static_argnames=("n_step", "m", "tile_n"))
def nnlm_forward(x_ids, params, *, n_step, m, tile_n=256):
    """x_ids: [batch, n_step] int32 token indices.  Returns f32 [batch, vocab]."""
    batch = x_ids.shape[0]
    K = n_step * m
    Ht, Wt, Ut = params["Ht"], params["Wt"], params["Ut"]
    d, b, C = params["d"], params["b"], params["C"]
    n_hidden = Ht.shape[1]
    vocab = Wt.shape[1]

    # Glue: embedding lookup + flatten (nn.Embedding + .view in the reference).
    X = jnp.take(C, x_ids, axis=0).reshape(batch, K)  # [B, K] bf16

    # Vocab tile: multiple of 256 fills the 256^2 MXU on v6e/v7x and is a
    # lane-dense multiple of 128 for unmasked stores on v5e.  For a large
    # vocab, streamed bytes per tile (double-buffered) stay well under the
    # scoped VMEM limit set below on all of v5e / v6e / v7x.
    TN = vocab if vocab <= tile_n else tile_n
    n_tiles = pl.cdiv(vocab, TN)

    elt = lambda a: a.size * a.dtype.itemsize
    cost = pl.CostEstimate(
        flops=2 * batch * K * vocab            # X @ Wt
        + 2 * batch * n_hidden * vocab         # hidden @ Ut
        + 2 * batch * K * n_hidden * n_tiles,  # hidden recompute per tile
        transcendentals=batch * n_hidden * n_tiles,
        bytes_accessed=elt(X) + elt(Ht) + elt(d) + elt(Wt) + elt(Ut) + elt(b)
        + batch * vocab * 4,
    )

    out = pl.pallas_call(
        nnlm_kernel,
        out_shape=jax.ShapeDtypeStruct((batch, vocab), jnp.float32),
        grid_spec=pltpu.PrefetchScalarGridSpec(
            num_scalar_prefetch=0,
            grid=(n_tiles,),
            in_specs=[
                pl.BlockSpec((batch, K), lambda j: (0, 0)),        # X (resident)
                pl.BlockSpec((K, n_hidden), lambda j: (0, 0)),     # Ht (resident)
                pl.BlockSpec((1, n_hidden), lambda j: (0, 0)),     # d (resident)
                pl.BlockSpec((K, TN), lambda j: (0, j)),           # Wt tile
                pl.BlockSpec((n_hidden, TN), lambda j: (0, j)),    # Ut tile
                pl.BlockSpec((1, TN), lambda j: (0, j)),           # b tile
            ],
            out_specs=pl.BlockSpec((batch, TN), lambda j: (0, j)),  # out tile
        ),
        compiler_params=pltpu.CompilerParams(
            # Vocab tiles are independent -> shard across both TCs on v7x
            # (no-op on single-TC v5e/v6e).
            dimension_semantics=("parallel",),
            vmem_limit_bytes=32 * 1024 * 1024,
        ),
        cost_estimate=cost,
    )(X, Ht, d, Wt, Ut, b)
    return out


if __name__ == "__main__":
    # Small, module-consistent shapes (vocab chosen so the vocab grid has >1 tile).
    vocab_size = 512
    m = 16
    n_hidden = 64
    n_step = 4
    batch = 8

    key = jax.random.PRNGKey(0)
    k_c, k_h, k_u, k_w, k_x = jax.random.split(key, 5)

    # Deterministic synthetic parameters (shapes match the PyTorch __init__).
    C = jax.random.normal(k_c, (vocab_size, m), jnp.float32) * 0.1
    H_w = jax.random.normal(k_h, (n_hidden, n_step * m), jnp.float32) * 0.1
    U_w = jax.random.normal(k_u, (vocab_size, n_hidden), jnp.float32) * 0.1
    W_w = jax.random.normal(k_w, (vocab_size, n_step * m), jnp.float32) * 0.1
    d = jnp.ones((n_hidden,), jnp.float32)    # torch.ones(n_hidden)
    b = jnp.ones((vocab_size,), jnp.float32)  # torch.ones(vocab_size)

    x_ids = jax.random.randint(k_x, (batch, n_step), 0, vocab_size, jnp.int32)

    # One-time parameter prep (transpose + bf16 cast) — not in the hot path.
    params = prepare_nnlm_params(C, H_w, d, U_w, W_w, b)

    out = nnlm_forward(x_ids, params, n_step=n_step, m=m, tile_n=256)
    out = jax.block_until_ready(out)

    # Pure-JAX f32 reference of the same math (bf16 weights in the kernel ->
    # relaxed tolerance, f32 accumulation keeps the error small).
    X_ref = jnp.take(C, x_ids, axis=0).reshape(batch, n_step * m)
    ref = b + X_ref @ W_w.T + jnp.tanh(d + X_ref @ H_w.T) @ U_w.T
    assert out.shape == (batch, vocab_size)
    assert jnp.allclose(out, ref, atol=5e-2, rtol=5e-2), (
        float(jnp.max(jnp.abs(out - ref)))
    )

    print("KERNEL_OK")
</pallas_src>

<mosaic_0001>
module attributes {stable_mosaic.version = 11 : i64} {
  func.func @nnlm_kernel(%arg0: i32, %arg1: memref<8x64xbf16, #tpu.memory_space<vmem>>, %arg2: memref<64x64xbf16, #tpu.memory_space<vmem>>, %arg3: memref<1x64xf32, #tpu.memory_space<vmem>>, %arg4: memref<64x256xbf16, #tpu.memory_space<vmem>>, %arg5: memref<64x256xbf16, #tpu.memory_space<vmem>>, %arg6: memref<1x256xf32, #tpu.memory_space<vmem>>, %arg7: memref<8x256xf32, #tpu.memory_space<vmem>>) attributes {dimension_semantics = [#tpu.dimension_semantics<parallel>], iteration_bounds = array<i64: 2>, scalar_prefetch = 0 : i64, scratch_operands = 0 : i64, tpu.core_type = #tpu.core_type<tc>, window_params = [{pipeline_mode = #tpu.pipeline_mode<synchronous>, transform_indices = @transform_0, window_bounds = array<i64: 8, 64>}, {pipeline_mode = #tpu.pipeline_mode<synchronous>, transform_indices = @transform_1, window_bounds = array<i64: 64, 64>}, {pipeline_mode = #tpu.pipeline_mode<synchronous>, transform_indices = @transform_2, window_bounds = array<i64: 1, 64>}, {transform_indices = @transform_3, window_bounds = array<i64: 64, 256>}, {transform_indices = @transform_4, window_bounds = array<i64: 64, 256>}, {transform_indices = @transform_5, window_bounds = array<i64: 1, 256>}, {transform_indices = @transform_6, window_bounds = array<i64: 8, 256>}]} {
    %c0 = arith.constant 0 : index
    %c0_0 = arith.constant 0 : index
    %0 = vector.load %arg1[%c0, %c0_0] : memref<8x64xbf16, #tpu.memory_space<vmem>>, vector<8x64xbf16>
    %c0_1 = arith.constant 0 : index
    %c0_2 = arith.constant 0 : index
    %1 = vector.load %arg3[%c0_1, %c0_2] : memref<1x64xf32, #tpu.memory_space<vmem>>, vector<1x64xf32>
    %c0_3 = arith.constant 0 : index
    %c0_4 = arith.constant 0 : index
    %2 = vector.load %arg2[%c0_3, %c0_4] : memref<64x64xbf16, #tpu.memory_space<vmem>>, vector<64x64xbf16>
    %cst = arith.constant dense<0.000000e+00> : vector<8x64xf32>
    %3 = tpu.matmul %0, %2, %cst {dimension_numbers = #tpu.dot_dimension_numbers<[1], [0], [0], [1], [0, 0, 1, 1], [], []>} : vector<8x64xbf16>, vector<64x64xbf16>, vector<8x64xf32> -> vector<8x64xf32>
    %4 = vector.broadcast %1 : vector<1x64xf32> to vector<8x64xf32>
    %5 = arith.addf %4, %3 : vector<8x64xf32>
    %6 = math.tanh %5 : vector<8x64xf32>
    %7 = arith.truncf %6 : vector<8x64xf32> to vector<8x64xbf16>
    %c0_5 = arith.constant 0 : index
    %c0_6 = arith.constant 0 : index
    %8 = vector.load %arg6[%c0_5, %c0_6] : memref<1x256xf32, #tpu.memory_space<vmem>>, vector<1x256xf32>
    %c0_7 = arith.constant 0 : index
    %c0_8 = arith.constant 0 : index
    %9 = vector.load %arg4[%c0_7, %c0_8] : memref<64x256xbf16, #tpu.memory_space<vmem>>, vector<64x256xbf16>
    %cst_9 = arith.constant dense<0.000000e+00> : vector<8x256xf32>
    %10 = tpu.matmul %0, %9, %cst_9 {dimension_numbers = #tpu.dot_dimension_numbers<[1], [0], [0], [1], [0, 0, 1, 1], [], []>} : vector<8x64xbf16>, vector<64x256xbf16>, vector<8x256xf32> -> vector<8x256xf32>
    %11 = vector.broadcast %8 : vector<1x256xf32> to vector<8x256xf32>
    %12 = arith.addf %11, %10 : vector<8x256xf32>
    %c0_10 = arith.constant 0 : index
    %c0_11 = arith.constant 0 : index
    %13 = vector.load %arg5[%c0_10, %c0_11] : memref<64x256xbf16, #tpu.memory_space<vmem>>, vector<64x256xbf16>
    %cst_12 = arith.constant dense<0.000000e+00> : vector<8x256xf32>
    %14 = tpu.matmul %7, %13, %cst_12 {dimension_numbers = #tpu.dot_dimension_numbers<[1], [0], [0], [1], [0, 0, 1, 1], [], []>} : vector<8x64xbf16>, vector<64x256xbf16>, vector<8x256xf32> -> vector<8x256xf32>
    %15 = arith.addf %12, %14 : vector<8x256xf32>
    %c0_13 = arith.constant 0 : index
    %c0_14 = arith.constant 0 : index
    %16 = vector.load %arg7[%c0_13, %c0_14] : memref<8x256xf32, #tpu.memory_space<vmem>>, vector<8x256xf32>
    tpu.vector_store %arg7[%c0_13, %c0_14], %15 {strides = array<i32>} : memref<8x256xf32, #tpu.memory_space<vmem>>, vector<8x256xf32>,
    return
  }
  func.func @transform_0(%arg0: i32) -> (i32, i32) {
    %c0_i32 = arith.constant 0 : i32
    %c0_i32_0 = arith.constant 0 : i32
    %c0_i32_1 = arith.constant 0 : i32
    return %c0_i32, %c0_i32_0 : i32, i32
  }
  func.func @transform_1(%arg0: i32) -> (i32, i32) {
    %c0_i32 = arith.constant 0 : i32
    %c0_i32_0 = arith.constant 0 : i32
    %c0_i32_1 = arith.constant 0 : i32
    return %c0_i32, %c0_i32_0 : i32, i32
  }
  func.func @transform_2(%arg0: i32) -> (i32, i32) {
    %c0_i32 = arith.constant 0 : i32
    %c0_i32_0 = arith.constant 0 : i32
    %c0_i32_1 = arith.constant 0 : i32
    return %c0_i32, %c0_i32_0 : i32, i32
  }
  func.func @transform_3(%arg0: i32) -> (i32, i32) {
    %c0_i32 = arith.constant 0 : i32
    %c0_i32_0 = arith.constant 0 : i32
    return %c0_i32, %arg0 : i32, i32
  }
  func.func @transform_4(%arg0: i32) -> (i32, i32) {
    %c0_i32 = arith.constant 0 : i32
    %c0_i32_0 = arith.constant 0 : i32
    return %c0_i32, %arg0 : i32, i32
  }
  func.func @transform_5(%arg0: i32) -> (i32, i32) {
    %c0_i32 = arith.constant 0 : i32
    %c0_i32_0 = arith.constant 0 : i32
    return %c0_i32, %arg0 : i32, i32
  }
  func.func @transform_6(%arg0: i32) -> (i32, i32) {
    %c0_i32 = arith.constant 0 : i32
    %c0_i32_0 = arith.constant 0 : i32
    return %c0_i32, %arg0 : i32, i32
  }
}

</mosaic_0001>

<bundles_post_ra>
// kernel: nnlm_forward.1
= control target key start
LH: loop header
LB: loop body
LE: loop exit
PB: predicated region body
PF: predicated region fallthrough
CT: control target
= control target key end

     0   :  { %11 = vsyncpa [#allocation5], 0  ;;  %s1204_s0 = inlined_call_operand.vmem [shape: bf16[8,64], index: 0, kind: input, shape index: {}]   ;;  %s1205_s1 = inlined_call_operand.vmem [shape: bf16[64,64], index: 1, kind: input, shape index: {}]   ;;  %s1206_s2 = inlined_call_operand.vmem [shape: f32[1,64], index: 2, kind: input, shape index: {}]   ;;  %s1207_s3 = inlined_call_operand.vmem [shape: bf16[64,512], index: 3, kind: input, shape index: {}]   ;;  %s1208_s4 = inlined_call_operand.vmem [shape: bf16[64,512], index: 4, kind: input, shape index: {}]   ;;  %s1209_s5 = inlined_call_operand.vmem [shape: f32[1,512], index: 5, kind: input, shape index: {}]   ;;  %s1210_s6 = inlined_call_operand.hbm [shape: f32[8,512], index: 6, kind: output, shape index: {}]  }
   0x1   :  { %13 = vsyncpa [#allocation5 + $0x1], 0  ;;  %s1056_s21 = smov 0   ;;  %s1058_s22 = smov 0  }
   0x2   :  { %s1060_s23 = smov 0   ;;  %s1062_s24 = smov 0  }
   0x3 LB: > { %s1077_s25 = sadd.s32 4294967295, %s1015_s24   ;;  %s812_s26 = sadd.s32 4294967294, %s1015_s24   ;;  %s1015_s24 = sphi %s1062_s24, %s1217_s24   ;;  %s1011_s23 = sphi %s1060_s23, %s1216_s23   ;;  %s1007_s22 = sphi %s1058_s22, %s1215_s22   ;;  %s1003_s21 = sphi %s1056_s21, %s1214_s21  }
   0x4   : > { %s1081_s27 = sadd.s32 1, %s1015_s24   ;;  %s89_s28 = sadd.s32 1, %s1011_s23 }
   0x5   : > { %s86_s29 = ssub.s32 %s1015_s24, %s1081_s27  ;;  %p96_p0 = scmp.ne.s32.totalorder %s1011_s23, %s1007_s22 }
   0x6   : > { %p87_p1 = scmp.eq.s32.totalorder %s86_s29, 0  ;;  %p97_p2 = scmp.eq.s32.totalorder %s1015_s24, 0 }
   0x7   : > { %p178_p3 = scmp.eq.s32.totalorder %s1077_s25, 1  ;;  %p183_p4 = scmp.ne.s32.totalorder %s1007_s22, %s1003_s21 }
   0x8   : > { %s1093_s30 = scalar_select %p87_p1, %s1011_s23, %s89_s28  }
   0x9   : > { %p1095_p5 = por %p97_p2, %p96_p0  ;;  %p1099_p6 = por %p178_p3, %p96_p0 }
   0xa   : > { %p184_p7 = scmp.eq.s32.totalorder %s812_s26, 1  ;;  %p814_p9 = scmp.ge.s32.totalorder %s1015_s24, 2 }
   0xc   : > { %p1103_p8 = por %p184_p7, %p183_p4  ;;  %209 = sbr.rel (%p814_p9) target bundleno = 35 (0x23), region = 28 }
  0x13   : > { %212 = sbr.rel (!%p1095_p5) target bundleno = 27 (0x1b), region = 32  ;;  %s214_s10 = sand.u32 (%p1095_p5), 1, %s1011_s23  }
  0x14   : > { %s855_s11 = sshll.u32 (%p1095_p5), %s1015_s24, 3  ;;  %s815_s12 = sshll.u32 (%p1095_p5), %s214_s10, 6 }
  0x15   : > { %s219_s15 = scalar_lea.vmem (%p1095_p5), %s1207_s3, %s855_s11  ;;  %s216_s16 = scalar_lea.vmem (%p1095_p5), [#allocation2], %s815_s12 }
  0x16   : > { %v261_v0 = vld [vmem:[%s219_s15] sm:$0xff] (%p1095_p5)  ;;  %v263_v1 = vld [vmem:[%s219_s15 + $0x10] sm:$0xff] (%p1095_p5) }
  0x17   : > { %v265_v2 = vld [vmem:[%s219_s15 + $0x20] sm:$0xff] (%p1095_p5)  ;;  %262 = vst [vmem:[%s216_s16] sm:$0xff] (%p1095_p5), %v261_v0  ;;  %264 = vst [vmem:[%s216_s16 + $0x8] sm:$0xff] (%p1095_p5), %v263_v1  ;;  %v267_v3 = vld [vmem:[%s219_s15 + $0x30] sm:$0xff] (%p1095_p5) }
  0x18   : > { %266 = vst [vmem:[%s216_s16 + $0x10] sm:$0xff] (%p1095_p5), %v265_v2  ;;  %v269_v4 = vld [vmem:[%s219_s15 + $0x40] sm:$0xff] (%p1095_p5)  ;;  %v271_v5 = vld [vmem:[%s219_s15 + $0x50] sm:$0xff] (%p1095_p5)  ;;  %268 = vst [vmem:[%s216_s16 + $0x18] sm:$0xff] (%p1095_p5), %v267_v3 }
  0x19   : > { %270 = vst [vmem:[%s216_s16 + $0x20] sm:$0xff] (%p1095_p5), %v269_v4  ;;  %272 = vst [vmem:[%s216_s16 + $0x28] sm:$0xff] (%p1095_p5), %v271_v5  ;;  %v273_v6 = vld [vmem:[%s219_s15 + $0x60] sm:$0xff] (%p1095_p5)  ;;  %v275_v7 = vld [vmem:[%s219_s15 + $0x70] sm:$0xff] (%p1095_p5) }
  0x1a   : > { %274 = vst [vmem:[%s216_s16 + $0x30] sm:$0xff] %v273_v6  ;;  %276 = vst [vmem:[%s216_s16 + $0x38] sm:$0xff] %v275_v7 }
  0x1b PF: > { %282 = sbr.rel (!%p1095_p5) target bundleno = 35 (0x23), region = 70  ;;  %s284_s17 = sand.u32 (%p1095_p5), 1, %s1011_s23  }
  0x1c   : > { %s856_s18 = sshll.u32 (%p1095_p5), %s1015_s24, 3  ;;  %s818_s19 = sshll.u32 (%p1095_p5), %s284_s17, 6 }
  0x1d   : > { %s289_s28 = scalar_lea.vmem (%p1095_p5), %s1208_s4, %s856_s18  ;;  %s286_s29 = scalar_lea.vmem (%p1095_p5), [#allocation3], %s818_s19 }
  0x1e   : > { %v331_v8 = vld [vmem:[%s289_s28] sm:$0xff] (%p1095_p5)  ;;  %v333_v9 = vld [vmem:[%s289_s28 + $0x10] sm:$0xff] (%p1095_p5) }
  0x1f   : > { %v335_v10 = vld [vmem:[%s289_s28 + $0x20] sm:$0xff] (%p1095_p5)  ;;  %332 = vst [vmem:[%s286_s29] sm:$0xff] (%p1095_p5), %v331_v8  ;;  %334 = vst [vmem:[%s286_s29 + $0x8] sm:$0xff] (%p1095_p5), %v333_v9  ;;  %v337_v11 = vld [vmem:[%s289_s28 + $0x30] sm:$0xff] (%p1095_p5) }
  0x20   : > { %336 = vst [vmem:[%s286_s29 + $0x10] sm:$0xff] (%p1095_p5), %v335_v10  ;;  %v339_v12 = vld [vmem:[%s289_s28 + $0x40] sm:$0xff] (%p1095_p5)  ;;  %v341_v13 = vld [vmem:[%s289_s28 + $0x50] sm:$0xff] (%p1095_p5)  ;;  %338 = vst [vmem:[%s286_s29 + $0x18] sm:$0xff] (%p1095_p5), %v337_v11 }
  0x21   : > { %340 = vst [vmem:[%s286_s29 + $0x20] sm:$0xff] (%p1095_p5), %v339_v12  ;;  %342 = vst [vmem:[%s286_s29 + $0x28] sm:$0xff] (%p1095_p5), %v341_v13  ;;  %v343_v14 = vld [vmem:[%s289_s28 + $0x60] sm:$0xff] (%p1095_p5)  ;;  %v345_v15 = vld [vmem:[%s289_s28 + $0x70] sm:$0xff] (%p1095_p5) }
  0x22   : > { %344 = vst [vmem:[%s286_s29 + $0x30] sm:$0xff] %v343_v14  ;;  %346 = vst [vmem:[%s286_s29 + $0x38] sm:$0xff] %v345_v15 }
  0x23 PF: > { %p821_p10 = scmp.ge.s32.totalorder %s1015_s24, 1  ;;  %p359_p11 = scmp.lt.s32.totalorder %s1015_s24, 3 }
  0x25   : > { %p360_p12 = pnand %p821_p10, %p359_p11 }
  0x26   : > { %v923_v16 = vld [vmem:[%s1205_s1] sm:$0xff] (!%p360_p12)   ;;  %v1017_v17 = vmov (!%p360_p12), 0.0   ;;  %v924_v18 = vld [vmem:[%s1205_s1 + $0x8] sm:$0xff] (!%p360_p12)   ;;  %vm1018_vm0 = vmmov (!%p360_p12), 0   ;;  %s1133_s13 = sand.u32 (!%p360_p12), 1, %s1007_s22   ;;  %v925_v19 = vld [vmem:[%s1205_s1 + $0x10] sm:$0xff] (!%p360_p12)   ;;  %v597_v47 = vlaneseq (!%p360_p12) }
  0x27   : > { %363 = sbr.rel (%p360_p12) target bundleno = 511 (0x1ff), region = 112  ;;  %863 = vmatprep.subr.bf16.mxu0 (!%p360_p12), %v1017_v17  ;;  %871 = vmatprep.mubr.msk.bf16.mxu0 (!%p360_p12), %vm1018_vm0, %v1017_v17  ;;  %s822_s14 = sshll.u32 (!%p360_p12), %s1133_s13, 6  ;;  %v926_v23 = vld [vmem:[%s1205_s1 + $0x18] sm:$0xff] (!%p360_p12)   ;;  %v419_v27 = vld [vmem:[%s1204_s0] sm:$0xf] (!%p360_p12)  ;;  %vm453_vm1 = vcmask (!%p360_p12), 523264  }
  0x28   : > { %864 = vmatpush3.bf16.msra.mxu0 (!%p360_p12), %v923_v16  ;;  %s368_s17 = scalar_lea.vmem (!%p360_p12), [#allocation2], %s822_s14  ;;  %s375_s20 = scalar_lea.vmem (!%p360_p12), [#allocation3], %s822_s14  ;;  %v1019_v32 = vmov (!%p360_p12), 0   ;;  %v831_v39 = vld [vmem:[%s1206_s2] ss:$0 sm:$0xff] (!%p360_p12)  ;;  %v598_v48 = vshrl.u32 (!%p360_p12), %v597_v47, 7 }
  0x29   : > { %865 = vmatprep.subr.bf16.mxu0 (!%p360_p12), %v1017_v17  ;;  %v927_v20 = vld [vmem:[%s368_s17 + $0x4] ss:$8 sps:$4 sm:$0xff] (!%p360_p12)   ;;  %v929_v21 = vld [vmem:[%s368_s17] ss:$8 sps:$4 sm:$0xff] (!%p360_p12)   ;;  %v930_v22 = vld [vmem:[%s368_s17 + $0x14] ss:$8 sps:$4 sm:$0xff] (!%p360_p12)   ;;  %587 = vmatprep.mubr.bf16.mxu1 (!%p360_p12), %v1019_v32 }
  0x2a   : > { %555 = vmatprep.subr.bf16.mxu1 (!%p360_p12), %v927_v20  ;;  %v932_v24 = vld [vmem:[%s368_s17 + $0x10] ss:$8 sps:$4 sm:$0xff] (!%p360_p12)   ;;  %v933_v25 = vld [vmem:[%s368_s17 + $0x24] ss:$8 sps:$4 sm:$0xff] (!%p360_p12)   ;;  %v935_v26 = vld [vmem:[%s368_s17 + $0x20] ss:$8 sps:$4 sm:$0xff] (!%p360_p12)  }
  0x2b   : > { %556 = vmatpush1.bf16.msra.mxu1 (!%p360_p12), %v929_v21  ;;  %v936_v28 = vld [vmem:[%s368_s17 + $0x34] ss:$8 sps:$4 sm:$0xff] (!%p360_p12)   ;;  %v938_v29 = vld [vmem:[%s368_s17 + $0x30] ss:$8 sps:$4 sm:$0xff] (!%p360_p12)   ;;  %v941_v30 = vld [vmem:[%s375_s20 + $0x4] ss:$8 sps:$4 sm:$0xff] (!%p360_p12)  }
  0x2c   : > { %866 = vmatpush3.bf16.msra.mxu0 (!%p360_p12), %v924_v18  ;;  %557 = vmatprep.subr.bf16.mxu1 (!%p360_p12), %v930_v22  ;;  %v939_v31 = vld [vmem:[%s375_s20] ss:$8 sps:$4 sm:$0xff] (!%p360_p12)   ;;  %v944_v33 = vld [vmem:[%s375_s20 + $0x14] ss:$8 sps:$4 sm:$0xff] (!%p360_p12)   ;;  %v942_v34 = vld [vmem:[%s375_s20 + $0x10] ss:$8 sps:$4 sm:$0xff] (!%p360_p12)  }
  0x2d   : > { %867 = vmatprep.subr.bf16.mxu0 (!%p360_p12), %v1017_v17  ;;  %v947_v35 = vld [vmem:[%s375_s20 + $0x24] ss:$8 sps:$4 sm:$0xff] (!%p360_p12)   ;;  %v945_v36 = vld [vmem:[%s375_s20 + $0x20] ss:$8 sps:$4 sm:$0xff] (!%p360_p12)   ;;  %v950_v37 = vld [vmem:[%s375_s20 + $0x34] ss:$8 sps:$4 sm:$0xff] (!%p360_p12)  }
  0x2e   : > { %v948_v38 = vld [vmem:[%s375_s20 + $0x30] ss:$8 sps:$4 sm:$0xff]   ;;  %s825_s10 = sshll.u32 %s1077_s25, 1  ;;  %s824_s15 = sshll.u32 %s1133_s13, 4  ;;  %v599_v49 = vsub.s32 0, %v598_v48  ;;  %v603_v51 = vsub.s32 1, %v598_v48 }
  0x2f   : > { %558 = vmatpush1.bf16.msra.mxu1 %v932_v24  ;;  %p413_p13 = scmp.lt.s32.totalorder %s825_s10, 3  ;;  %s857_s16 = sshll.u32 %s1077_s25, 8 }
  0x30   : > { %868 = vmatpush3.bf16.msra.mxu0 %v925_v19  ;;  %559 = vmatprep.subr.bf16.mxu1 %v933_v25  ;;  %s409_s17 = scalar_lea.vmem [#allocation4], %s824_s15  ;;  %s1160_s26 = scalar_lea.hbm %s1210_s6, %s857_s16 }
  0x31   : > { %869 = vmatprep.subr.bf16.mxu0 %v1017_v17  ;;  %s1219_s10 = smov (!%p413_p13, %s825_s10), 3  ;;  %s720_s18 = sshll.u32 %s409_s17, 4  ;;  %s1162_s18 = int_to_ptr.vmem [resolvable:$true] %s720_s18 }
  0x32   : > { %s415_s14 = scalar_lea.vmem %s1209_s5, %s1219_s10  ;;  %s706_s25 = scalar_lea.sflag [#allocation5], %s1133_s13 }
  0x33   : > { %560 = vmatpush1.bf16.msra.mxu1 %v935_v26  ;;  %v506_v50 = vld [vmem:[%s415_s14] sm:$0x3]  ;;  %s953_s28 = scalar_lea.vmem %s1162_s18, 256  ;;  %s1020_s29 = smov [#allocation4]  }
  0x34   : > { %870 = vmatpush3.bf16.msra.mxu0 %v926_v23  ;;  %561 = vmatprep.subr.bf16.mxu1 %v936_v28  ;;  %v600_v52 = vrot.slane %v506_v50, %v599_v49  ;;  %v604_v53 = vrot.slane %v506_v50, %v603_v51  ;;  %p954_p0 = scmp.ne.s32.totalorder %s1162_s18, %s953_s28  ;;  %s957_s7 = sshll.u32 %s1020_s29, 4  ;;  %s958_s7 = int_to_ptr.vmem [resolvable:$false] %s957_s7 }
  0x35   : > { %s959_s10 = scalar_lea.vmem %s958_s7, 512  ;;  %p960_p3 = scmp.lt.s32.totalorder %s1162_s18, %s958_s7 }
  0x36   : > { %p955_p1 = pnand %p954_p0, %p1099_p6  ;;  %p961_p4 = scmp.lt.s32.totalorder %s959_s10, %s953_s28 }
  0x37   : > { %872 = vmatmul.mubr.msk.bf16.vlgmr.msra.gmra.mrb[0].mxu0 %vm453_vm1, %v419_v27  ;;  %562 = vmatpush1.bf16.msra.mxu1 %v938_v29 }
  0x38   : > { %660 = vmatprep.subr.bf16.mxu1 %v941_v30  ;;  %p956_p2 = pneg %p955_p1  ;;  %p962_p5 = por %p961_p4, %p960_p3 }
  0x3a   : > { %840 = vmatmul.mubr.msk.bf16.vlgmr.msra.gmra.mrb[0].mxu1 %vm453_vm1, %v419_v27  ;;  %p963_p7 = pnand %p962_p5, %p956_p2 }
  0x3b   : > { %661 = vmatpush1.bf16.msra.mxu1 %v939_v31  ;;  %692 = vmatprep.mubr.bf16.mxu1 %v1019_v32 }
  0x3c   : > { %662 = vmatprep.subr.bf16.mxu1 %v944_v33 }
  0x3f   : > { %663 = vmatpush1.bf16.msra.mxu1 %v942_v34 }
  0x40   : > { %664 = vmatprep.subr.bf16.mxu1 %v947_v35 }
  0x43   : > { %665 = vmatpush1.bf16.msra.mxu1 %v945_v36 }
  0x44   : > { %666 = vmatprep.subr.bf16.mxu1 %v950_v37 }
  0x47   : > { %667 = vmatpush1.bf16.msra.mxu1 %v948_v38 }
 0x10a   : > { %v491_v40 = vpop.f32.mrb[0].mxu0 }
 0x10b   : > { %v503_v41 = vadd.f32 %v831_v39, %v491_v40  ;;  %v873_v42 = vpop.f32.mrb[1].mxu0 }
 0x10c   : > { %v494_v43 = vpop.f32.mrb[2].mxu0 }
 0x10d   : > { %951 = vtanh.f32 %v503_v41  ;;  %v874_v44 = vpop.f32.mrb[3].mxu0 }
 0x117   : > { %v952_v45 = vpop.eup %951 }
 0x118   : > { %v505_v46 = vpack.c.bf16 %v952_v45, %v952_v45 }
 0x11a   : > { %849 = vmatmul.mubr.msk.bf16.vlgmr.msra.gmra.mrb[0].mxu1 %vm453_vm1, %v505_v46 }
 0x1ed   : > { %v694_v54 = vpop.f32.mrb[0].mxu1 }
 0x1ee   : > { %v875_v55 = vadd.f32 %v694_v54, %v600_v52  ;;  %v696_v56 = vpop.f32.mrb[1].mxu1 }
 0x1ef   : > { %v876_v57 = vadd.f32 %v696_v56, %v604_v53  ;;  %v698_v58 = vpop.f32.mrb[2].mxu1 }
 0x1f0   : > { %703 = vst [vmem:[%s409_s17] sm:$0xff] %v875_v55  ;;  %v699_v59 = vpop.f32.mrb[3].mxu1 }
 0x1f1   : > { %704 = vst [vmem:[%s409_s17 + $0x8] sm:$0xff] %v876_v57 }
 0x1f2   : > { %966 = shalt.err (!%p963_p7)
}
 0x1f3   : > { %s967_s13 = scalar_lea.hbm %s1160_s26, 256  ;;  %s971_s14 = scalar_lea.hbm %s1210_s6, 512 }
 0x1f4   : > { %p968_p10 = scmp.ne.s32.totalorder %s1160_s26, %s967_s13  ;;  %p972_p13 = scmp.lt.u32.totalorder %s1160_s26, %s1210_s6 }
 0x1f5   : > { %p973_p0 = scmp.lt.u32.totalorder %s971_s14, %s967_s13  ;;  %p975_p2 = scmp.lt.u32.totalorder %s967_s13, %s1160_s26 }
 0x1f6   : > { %p969_p11 = pnand %p968_p10, %p1099_p6 }
 0x1f7   : > { %p974_p1 = por %p973_p0, %p972_p13 }
 0x1f8   : > { %p970_p12 = pneg %p969_p11 }
 0x1f9   : > { %p976_p3 = por %p975_p2, %p974_p1 }
 0x1fb   : > { %p977_p4 = pnand %p976_p3, %p970_p12 }
 0x1fd   : > { %980 = shalt.err (!%p977_p4)
}
 0x1fe   : > { %881 = dma.vmem_to_hbm [thread:$0]  (%p1099_p6), %s1162_s18, 256, %s1160_s26, %s706_s25  }
 0x1ff PF: > { %s732_s17 = sand.u32 1, %s1003_s21   ;;  %p884_p5 = pnand %p814_p9, %p1103_p8 }
 0x200   : > { %s733_s19 = scalar_lea.sflag [#allocation5], %s732_s17 }
 0x201   : > { %998 = dma.done.wait (!%p884_p5), %s733_s19, 256  }
 0x202   : > { %1000 = vsyncadd (!%p884_p5), %s733_s19, 4294967040  ;;  %p16_p7 = scmp.ge.s32.totalorder %s1081_s27, 4   ;;  %s1214_s21 = smov %s1007_s22 }
 0x203   : > { %s1215_s22 = smov %s1011_s23  ;;  %s1216_s23 = smov %s1093_s30 }
 0x204   : > { %s1217_s24 = smov %s1081_s27  ;;  %18 = sbr.rel (!%p16_p7) target bundleno = 3 (0x3), region = 171 }
 0x20b   :  { %738 = vsyncpa [#allocation5], 1 }
 0x20c   :  { %740 = vsyncpa [#allocation5 + $0x1], 1 }

</bundles_post_ra>
